<compile_context>
chip_gen: v5e
topology: v5e:2x2
jax: 0.10.0
libtpu: 0.0.40
codegen_flags: <defaults>
</compile_context>

<pallas_src>
import numpy as np
import jax
import jax.numpy as jnp
from jax import lax
from jax.experimental import pallas as pl
from jax.experimental.pallas import tpu as pltpu


def _make_kernels(radius):
    """Exactly reproduces the weight construction in SideWindowBoxFilter.__init__."""
    r = radius
    k = np.ones((2 * r + 1, 1)) / (2 * r + 1)
    k_L = k.copy()
    k_L[r + 1:] = 0
    k_L = k_L / np.sum(k_L)
    k_R = k_L[::-1, :]
    kernel1 = np.array([k_L, k_L, k_R, k_R, k_L, k_R, k, k]).astype(np.float32)       # (8, 2r+1, 1)
    kernel2 = np.array([k_L.T, k_R.T, k_L.T, k_R.T, k.T, k.T, k_L.T, k_R.T]).astype(np.float32)  # (8, 1, 2r+1)
    return kernel1[:, :, 0], kernel2[:, 0, :]   # both (8, 2r+1)


def _round_up(x, m):
    return -(-x // m) * m


def _make_swbf_kernel(radius, iteration, Hp, Wp, tile_rows, halo_pad, block_rows,
                      Wp2, R_total, w_half, w_full):
    """Kernel processing one (block_rows, Wp2) row-tile (with halo) of one channel."""
    r = radius
    s_hh = float(w_half * w_half)   # (L/R vertical) x (L/R horizontal)
    s_hf = float(w_half * w_full)   # one arm of the side window is the full box

    def kernel(u_hbm, out_ref, xbuf, sem):
        c = pl.program_id(0)
        t = pl.program_id(1)

        # manual halo'd DMA: rows [t*tile_rows, t*tile_rows + block_rows) of
        # channel c in the (C*R_total, Wp2)-flattened padded image.
        row0 = pl.multiple_of(c * R_total + t * tile_rows, 8)
        cp = pltpu.make_async_copy(u_hbm.at[pl.ds(row0, block_rows), :], xbuf, sem)
        cp.start()
        cp.wait()
        X0 = xbuf[...]                                     # (block_rows, Wp2) f32

        # Single interior mask: rows inside [0, Hp) of the logical padded image
        # and columns inside [0, Wp).  Applied once per iteration; together
        # with the >= r zero halo it reproduces the convs' zero padding and
        # makes every pltpu.roll wrap-around land on zeros.
        rows = lax.broadcasted_iota(jnp.int32, (block_rows, Wp2), 0)
        cols = lax.broadcasted_iota(jnp.int32, (block_rows, Wp2), 1)
        g = rows + (t * tile_rows - halo_pad)              # global padded-image row
        interior = (g >= 0) & (g < Hp) & (cols < Wp)

        def vshift(x, d):        # out[i, :] = x[i + d, :]
            return pltpu.roll(x, shift=(-d) % block_rows, axis=0)

        def hshift(x, d):        # out[:, j] = x[:, j + d]
            return pltpu.roll(x, shift=(-d) % Wp2, axis=1)

        def partial_sums(x, shift_fn):
            lo = x                               # taps -r..0 (unscaled)
            for d in range(-r, 0):
                lo = lo + shift_fn(x, d)
            hi = x                               # taps 0..r (unscaled)
            for d in range(1, r + 1):
                hi = hi + shift_fn(x, d)
            return lo, hi

        def one_iter(_, X):
            Xm = jnp.where(interior, X, 0.0)

            # vertical pass: only 3 distinct kernels (L, R, full), kept unscaled
            lo, hi = partial_sums(Xm, vshift)
            vF = lo + hi - Xm

            # horizontal pass on each distinct (unscaled) vertical output.
            # TODO(synk): for radius >= 2 switch these rolls to offset reads
            # from a zero-haloed VMEM scratch to unload the 2 XLU slots (v6e/v7x).
            loL, hiL = partial_sums(lo, hshift)
            loR, hiR = partial_sums(hi, hshift)
            loF, hiF = partial_sums(vF, hshift)

            # side-window outputs, original window order 0..7, scales folded in
            o2s = [
                loL * s_hh,                  # w0: (L, L)
                hiL * s_hh,                  # w1: (L, R)
                loR * s_hh,                  # w2: (R, L)
                hiR * s_hh,                  # w3: (R, R)
                (loL + hiL - lo) * s_hf,     # w4: (L, full)
                (loR + hiR - hi) * s_hf,     # w5: (R, full)
                loF * s_hf,                  # w6: (full, L)
                hiF * s_hf,                  # w7: (full, R)
            ]

            # torch.min(|d|) + gather(d): strict '<' keeps the first minimum.
            best_d = o2s[0] - Xm
            best_abs = jnp.abs(best_d)
            for o2 in o2s[1:]:
                dd = o2 - Xm
                da = jnp.abs(dd)
                take = da < best_abs
                best_d = jnp.where(take, dd, best_d)
                best_abs = jnp.where(take, da, best_abs)
            return Xm + best_d

        Xf = lax.fori_loop(0, iteration, one_iter, X0, unroll=(iteration <= 2))
        out_ref[...] = Xf[halo_pad:halo_pad + tile_rows, :]

    return kernel


def side_window_box_filter(img, radius, iteration):
    """img: (H, W, C) float array. Returns filtered (H, W, C) float32 array."""
    img = jnp.asarray(img, jnp.float32)
    H, W, C = img.shape
    r = radius
    Hp, Wp = H + 2 * r, W + 2 * r

    # lane padding with >= r zero columns past Wp (roll wrap-around lands on zeros)
    Wp2 = _round_up(max(Wp + r, 1), 128)

    # row tiling: halo of iteration*r rows, rounded to a sublane multiple
    halo_pad = _round_up(max(iteration * r, r), 8) if r > 0 else 0

    # pick the row-tile size so ~20 live (block_rows, Wp2) f32 tiles fit a
    # ~40 MiB budget (v7x has only 64 MiB VMEM per TensorCore).
    budget = 40 << 20
    max_block_rows = max(8, (budget // (20 * 4 * Wp2)) // 8 * 8)
    tile_rows = min(_round_up(Hp, 8), 512, max(8, max_block_rows - 2 * halo_pad))
    tile_rows = max(8, (tile_rows // 8) * 8)
    num_tiles = -(-Hp // tile_rows)
    tile_rows = _round_up(-(-Hp // num_tiles), 8)          # rebalance tiles
    num_tiles = -(-Hp // tile_rows)
    if num_tiles == 1:
        tile_rows = _round_up(Hp, 8)
        halo_pad = _round_up(r, 8) if r > 0 else 0         # no cross-tile halo needed
    block_rows = tile_rows + 2 * halo_pad
    # TODO(synk): extremely wide images combined with huge iteration*radius
    # halos can still exceed the budget at tile_rows=8; those need column tiling too.

    # one-time edge padding before the iterations + zero halo/alignment padding
    U0 = jnp.pad(img, ((r, r), (r, r), (0, 0)), mode="edge")        # (Hp, Wp, C)
    U0 = jnp.transpose(U0, (2, 0, 1))                               # (C, Hp, Wp)
    R_total = num_tiles * tile_rows + 2 * halo_pad
    U0 = jnp.pad(U0, ((0, 0),
                      (halo_pad, R_total - halo_pad - Hp),
                      (0, Wp2 - Wp)))                               # (C, R_total, Wp2)
    U0 = U0.reshape(C * R_total, Wp2)                               # flat rows for manual DMA

    k1, _ = _make_kernels(radius)
    w_half = float(k1[0, 0])      # k_L / k_R weight = 1/(r+1)
    w_full = float(k1[6, 0])      # full-box weight  = 1/(2r+1)

    kernel = _make_swbf_kernel(radius, iteration, Hp, Wp, tile_rows, halo_pad,
                               block_rows, Wp2, R_total, w_half, w_full)

    block_bytes = block_rows * Wp2 * 4
    out_bytes = tile_rows * Wp2 * 4
    # input scratch + double-buffered output blocks + ~16 live full-tile
    # temporaries / spill headroom; capped well below v7x's 64 MiB physical VMEM.
    vmem_limit = int(min(48 << 20,
                         max(32 << 20, 17 * block_bytes + 2 * out_bytes + (2 << 20))))

    out = pl.pallas_call(
        kernel,
        out_shape=jax.ShapeDtypeStruct((C, num_tiles * tile_rows, Wp2), jnp.float32),
        grid=(C, num_tiles),
        in_specs=[pl.BlockSpec(memory_space=pl.ANY)],
        out_specs=pl.BlockSpec((None, tile_rows, Wp2), lambda c, t: (c, t, 0)),
        scratch_shapes=[pltpu.VMEM((block_rows, Wp2), jnp.float32),
                        pltpu.SemaphoreType.DMA(())],
        compiler_params=pltpu.CompilerParams(
            dimension_semantics=("parallel", "parallel"),
            vmem_limit_bytes=vmem_limit,
        ),
    )(U0)

    # TODO(synk): for small W (or consumers that accept (C, H, W)) pack channels
    # along the lane axis / skip this transpose to avoid mostly-padding lanes.
    out = out[:, r:H + r, r:W + r]                                  # radius=0 safe
    return jnp.transpose(out, (1, 2, 0))                            # (H, W, C)


def _reference_numpy(img, radius, iteration):
    """Pure-numpy re-implementation of the PyTorch forward (for verification)."""
    r = radius
    K = 2 * r + 1
    k1, k2 = _make_kernels(radius)
    H, W, _ = img.shape
    U = np.pad(np.float32(img), ((r, r), (r, r), (0, 0)), "edge")    # (Hp, Wp, C)
    Hp, Wp, C = U.shape

    def shift_np(x, s, axis):
        if s == 0:
            return x
        out = np.zeros_like(x)
        n = x.shape[axis]
        src = [slice(None)] * x.ndim
        dst = [slice(None)] * x.ndim
        if s > 0:
            src[axis] = slice(s, n)
            dst[axis] = slice(0, n - s)
        else:
            src[axis] = slice(0, n + s)
            dst[axis] = slice(-s, n)
        out[tuple(dst)] = x[tuple(src)]
        return out

    for _ in range(iteration):
        X = U.transpose(2, 0, 1)                                     # (C, Hp, Wp)
        d = np.zeros((8, C, Hp, Wp), np.float32)
        for w in range(8):
            o1 = np.zeros_like(X)
            for t in range(K):
                o1 += k1[w, t] * shift_np(X, t - r, axis=1)
            o2 = np.zeros_like(X)
            for t in range(K):
                o2 += k2[w, t] * shift_np(o1, t - r, axis=2)
            d[w] = o2 - X
        idx = np.argmin(np.abs(d), axis=0)                           # (C, Hp, Wp)
        dm = np.take_along_axis(d, idx[None], axis=0)[0]
        U = U + dm.transpose(1, 2, 0)
    return U[r:H + r, r:W + r, :]


if __name__ == "__main__":
    H, W, C = 16, 16, 4
    radius, iteration = 1, 3

    key = jax.random.PRNGKey(0)
    img = jax.random.uniform(key, (H, W, C), dtype=jnp.float32)

    out = side_window_box_filter(img, radius, iteration)
    out = jax.block_until_ready(out)

    ref = _reference_numpy(np.asarray(img), radius, iteration)
    np.testing.assert_allclose(np.asarray(out), ref, rtol=1e-4, atol=1e-4)
    assert out.shape == (H, W, C) and out.dtype == jnp.float32

    print("KERNEL_OK")
</pallas_src>

<mosaic_0001>
module attributes {stable_mosaic.version = 11 : i64} {
  func.func @kernel(%arg0: i32, %arg1: i32, %arg2: memref<160x128xf32, #tpu.memory_space<any>>, %arg3: memref<1x24x128xf32, #tpu.memory_space<vmem>>, %arg4: memref<40x128xf32, #tpu.memory_space<vmem>>, %arg5: memref<!tpu.dma_semaphore, #tpu.memory_space<semaphore_mem>>) attributes {dimension_semantics = [#tpu.dimension_semantics<parallel>, #tpu.dimension_semantics<parallel>], iteration_bounds = array<i64: 4, 1>, scalar_prefetch = 0 : i64, scratch_operands = 2 : i64, tpu.core_type = #tpu.core_type<tc>, window_params = [{}, {transform_indices = @transform_1, window_bounds = array<i64: 1, 24, 128>}]} {
    %c40_i32 = arith.constant 40 : i32
    %0 = arith.muli %arg0, %c40_i32 : i32
    %c24_i32 = arith.constant 24 : i32
    %1 = arith.muli %arg1, %c24_i32 : i32
    %2 = arith.addi %0, %1 : i32
    %3 = tpu.assume_multiple %2, 8 : i32
    %c0_i32 = arith.constant 0 : i32
    %4 = tpu.memref_slice %arg2[%3, %c0_i32] : memref<160x128xf32, #tpu.memory_space<any>> -> memref<40x128xf32, #tpu.memory_space<any>>
    tpu.enqueue_dma source(%4 : memref<40x128xf32, #tpu.memory_space<any>>) target(%arg4 : memref<40x128xf32, #tpu.memory_space<vmem>>) target_semaphore(%arg5 : memref<!tpu.dma_semaphore, #tpu.memory_space<semaphore_mem>>)
    %c0_i32_0 = arith.constant 0 : i32
    %5 = tpu.memref_slice %arg2[%3, %c0_i32_0] : memref<160x128xf32, #tpu.memory_space<any>> -> memref<40x128xf32, #tpu.memory_space<any>>
    tpu.wait_dma2 semaphore(%arg5 : memref<!tpu.dma_semaphore, #tpu.memory_space<semaphore_mem>>) src(%5 : memref<40x128xf32, #tpu.memory_space<any>>) dst(%arg4 : memref<40x128xf32, #tpu.memory_space<vmem>>)
    %c0 = arith.constant 0 : index
    %c0_1 = arith.constant 0 : index
    %6 = vector.load %arg4[%c0, %c0_1] : memref<40x128xf32, #tpu.memory_space<vmem>>, vector<40x128xf32>
    %7 = tpu.iota {dimensions = array<i32: 0>} : vector<40x128xi32>
    %8 = tpu.iota {dimensions = array<i32: 1>} : vector<40x128xi32>
    %c24_i32_2 = arith.constant 24 : i32
    %9 = arith.muli %arg1, %c24_i32_2 : i32
    %c8_i32 = arith.constant 8 : i32
    %10 = arith.subi %9, %c8_i32 : i32
    %11 = vector.broadcast %10 : i32 to vector<40x128xi32>
    %12 = arith.addi %7, %11 : vector<40x128xi32>
    %c0_i32_3 = arith.constant 0 : i32
    %13 = vector.broadcast %c0_i32_3 : i32 to vector<40x128xi32>
    %14 = arith.cmpi sge, %12, %13 : vector<40x128xi32>
    %c18_i32 = arith.constant 18 : i32
    %15 = vector.broadcast %c18_i32 : i32 to vector<40x128xi32>
    %16 = arith.cmpi slt, %12, %15 : vector<40x128xi32>
    %17 = arith.andi %14, %16 : vector<40x128xi1>
    %c18_i32_4 = arith.constant 18 : i32
    %18 = vector.broadcast %c18_i32_4 : i32 to vector<40x128xi32>
    %19 = arith.cmpi slt, %8, %18 : vector<40x128xi32>
    %20 = arith.andi %17, %19 : vector<40x128xi1>
    %c0_i32_5 = arith.constant 0 : i32
    %c3_i32 = arith.constant 3 : i32
    %21 = arith.addi %c0_i32_5, %c3_i32 : i32
    %c1_i32 = arith.constant 1 : i32
    %22 = scf.for %arg6 = %c0_i32_5 to %21 step %c1_i32 iter_args(%arg7 = %6) -> (vector<40x128xf32>)  : i32 {
      %cst = arith.constant 0.000000e+00 : f32
      %27 = vector.broadcast %cst : f32 to vector<40x128xf32>
      %28 = arith.select %20, %arg7, %27 : vector<40x128xi1>, vector<40x128xf32>
      %c1_i32_9 = arith.constant 1 : i32
      %29 = tpu.dynamic_rotate %28 by %c1_i32_9 dim 0 : vector<40x128xf32>, i32 -> vector<40x128xf32>
      %30 = arith.addf %28, %29 : vector<40x128xf32>
      %c39_i32 = arith.constant 39 : i32
      %31 = tpu.dynamic_rotate %28 by %c39_i32 dim 0 : vector<40x128xf32>, i32 -> vector<40x128xf32>
      %32 = arith.addf %28, %31 : vector<40x128xf32>
      %33 = arith.addf %30, %32 : vector<40x128xf32>
      %34 = arith.subf %33, %28 : vector<40x128xf32>
      %c1_i32_10 = arith.constant 1 : i32
      %35 = tpu.dynamic_rotate %30 by %c1_i32_10 dim 1 : vector<40x128xf32>, i32 -> vector<40x128xf32>
      %36 = arith.addf %30, %35 : vector<40x128xf32>
      %c127_i32 = arith.constant 127 : i32
      %37 = tpu.dynamic_rotate %30 by %c127_i32 dim 1 : vector<40x128xf32>, i32 -> vector<40x128xf32>
      %38 = arith.addf %30, %37 : vector<40x128xf32>
      %c1_i32_11 = arith.constant 1 : i32
      %39 = tpu.dynamic_rotate %32 by %c1_i32_11 dim 1 : vector<40x128xf32>, i32 -> vector<40x128xf32>
      %40 = arith.addf %32, %39 : vector<40x128xf32>
      %c127_i32_12 = arith.constant 127 : i32
      %41 = tpu.dynamic_rotate %32 by %c127_i32_12 dim 1 : vector<40x128xf32>, i32 -> vector<40x128xf32>
      %42 = arith.addf %32, %41 : vector<40x128xf32>
      %c1_i32_13 = arith.constant 1 : i32
      %43 = tpu.dynamic_rotate %34 by %c1_i32_13 dim 1 : vector<40x128xf32>, i32 -> vector<40x128xf32>
      %44 = arith.addf %34, %43 : vector<40x128xf32>
      %c127_i32_14 = arith.constant 127 : i32
      %45 = tpu.dynamic_rotate %34 by %c127_i32_14 dim 1 : vector<40x128xf32>, i32 -> vector<40x128xf32>
      %46 = arith.addf %34, %45 : vector<40x128xf32>
      %cst_15 = arith.constant 2.500000e-01 : f32
      %47 = vector.broadcast %cst_15 : f32 to vector<40x128xf32>
      %48 = arith.mulf %36, %47 : vector<40x128xf32>
      %cst_16 = arith.constant 2.500000e-01 : f32
      %49 = vector.broadcast %cst_16 : f32 to vector<40x128xf32>
      %50 = arith.mulf %38, %49 : vector<40x128xf32>
      %cst_17 = arith.constant 2.500000e-01 : f32
      %51 = vector.broadcast %cst_17 : f32 to vector<40x128xf32>
      %52 = arith.mulf %40, %51 : vector<40x128xf32>
      %cst_18 = arith.constant 2.500000e-01 : f32
      %53 = vector.broadcast %cst_18 : f32 to vector<40x128xf32>
      %54 = arith.mulf %42, %53 : vector<40x128xf32>
      %55 = arith.addf %36, %38 : vector<40x128xf32>
      %56 = arith.subf %55, %30 : vector<40x128xf32>
      %cst_19 = arith.constant 0.166666672 : f32
      %57 = vector.broadcast %cst_19 : f32 to vector<40x128xf32>
      %58 = arith.mulf %56, %57 : vector<40x128xf32>
      %59 = arith.addf %40, %42 : vector<40x128xf32>
      %60 = arith.subf %59, %32 : vector<40x128xf32>
      %cst_20 = arith.constant 0.166666672 : f32
      %61 = vector.broadcast %cst_20 : f32 to vector<40x128xf32>
      %62 = arith.mulf %60, %61 : vector<40x128xf32>
      %cst_21 = arith.constant 0.166666672 : f32
      %63 = vector.broadcast %cst_21 : f32 to vector<40x128xf32>
      %64 = arith.mulf %44, %63 : vector<40x128xf32>
      %cst_22 = arith.constant 0.166666672 : f32
      %65 = vector.broadcast %cst_22 : f32 to vector<40x128xf32>
      %66 = arith.mulf %46, %65 : vector<40x128xf32>
      %67 = arith.subf %48, %28 : vector<40x128xf32>
      %68 = math.absf %67 : vector<40x128xf32>
      %69 = arith.subf %50, %28 : vector<40x128xf32>
      %70 = math.absf %69 : vector<40x128xf32>
      %71 = arith.cmpf olt, %70, %68 : vector<40x128xf32>
      %72 = arith.select %71, %69, %67 : vector<40x128xi1>, vector<40x128xf32>
      %73 = arith.select %71, %70, %68 : vector<40x128xi1>, vector<40x128xf32>
      %74 = arith.subf %52, %28 : vector<40x128xf32>
      %75 = math.absf %74 : vector<40x128xf32>
      %76 = arith.cmpf olt, %75, %73 : vector<40x128xf32>
      %77 = arith.select %76, %74, %72 : vector<40x128xi1>, vector<40x128xf32>
      %78 = arith.select %76, %75, %73 : vector<40x128xi1>, vector<40x128xf32>
      %79 = arith.subf %54, %28 : vector<40x128xf32>
      %80 = math.absf %79 : vector<40x128xf32>
      %81 = arith.cmpf olt, %80, %78 : vector<40x128xf32>
      %82 = arith.select %81, %79, %77 : vector<40x128xi1>, vector<40x128xf32>
      %83 = arith.select %81, %80, %78 : vector<40x128xi1>, vector<40x128xf32>
      %84 = arith.subf %58, %28 : vector<40x128xf32>
      %85 = math.absf %84 : vector<40x128xf32>
      %86 = arith.cmpf olt, %85, %83 : vector<40x128xf32>
      %87 = arith.select %86, %84, %82 : vector<40x128xi1>, vector<40x128xf32>
      %88 = arith.select %86, %85, %83 : vector<40x128xi1>, vector<40x128xf32>
      %89 = arith.subf %62, %28 : vector<40x128xf32>
      %90 = math.absf %89 : vector<40x128xf32>
      %91 = arith.cmpf olt, %90, %88 : vector<40x128xf32>
      %92 = arith.select %91, %89, %87 : vector<40x128xi1>, vector<40x128xf32>
      %93 = arith.select %91, %90, %88 : vector<40x128xi1>, vector<40x128xf32>
      %94 = arith.subf %64, %28 : vector<40x128xf32>
      %95 = math.absf %94 : vector<40x128xf32>
      %96 = arith.cmpf olt, %95, %93 : vector<40x128xf32>
      %97 = arith.select %96, %94, %92 : vector<40x128xi1>, vector<40x128xf32>
      %98 = arith.select %96, %95, %93 : vector<40x128xi1>, vector<40x128xf32>
      %99 = arith.subf %66, %28 : vector<40x128xf32>
      %100 = math.absf %99 : vector<40x128xf32>
      %101 = arith.cmpf olt, %100, %98 : vector<40x128xf32>
      %102 = arith.select %101, %99, %97 : vector<40x128xi1>, vector<40x128xf32>
      %103 = arith.addf %28, %102 : vector<40x128xf32>
      scf.yield %103 : vector<40x128xf32>
    }
    %23 = vector.extract_strided_slice %22 {offsets = [8, 0], sizes = [24, 128], strides = [1, 1]} : vector<40x128xf32> to vector<24x128xf32>
    %c0_6 = arith.constant 0 : index
    %c0_7 = arith.constant 0 : index
    %c0_8 = arith.constant 0 : index
    %24 = vector.load %arg3[%c0_6, %c0_7, %c0_8] : memref<1x24x128xf32, #tpu.memory_space<vmem>>, vector<1x24x128xf32>
    %25 = vector.shape_cast %24 : vector<1x24x128xf32> to vector<24x128xf32>
    %26 = vector.shape_cast %23 : vector<24x128xf32> to vector<1x24x128xf32>
    tpu.vector_store %arg3[%c0_6, %c0_7, %c0_8], %26 {strides = array<i32>} : memref<1x24x128xf32, #tpu.memory_space<vmem>>, vector<1x24x128xf32>,
    return
  }
  func.func @transform_1(%arg0: i32, %arg1: i32) -> (i32, i32, i32) {
    %c0_i32 = arith.constant 0 : i32
    %c0_i32_0 = arith.constant 0 : i32
    return %arg0, %arg1, %c0_i32 : i32, i32, i32
  }
}

</mosaic_0001>

<bundles_post_ra>
// kernel: tpu_custom_call.1
= control target key start
LH: loop header
LB: loop body
LE: loop exit
PB: predicated region body
PF: predicated region fallthrough
CT: control target
= control target key end

     0   :  { %6 = vsyncpa [#allocation5], 0  ;;  %s1247_s0 = inlined_call_operand.hbm [shape: f32[160,128], index: 0, kind: input, shape index: {}]   ;;  %s1248_s1 = inlined_call_operand.hbm [shape: f32[4,24,128], index: 1, kind: output, shape index: {}]  }
   0x1   :  { %8 = vsyncpa [#allocation5 + $0x1], 0  ;;  %s841_s6 = smov 0   ;;  %s843_s7 = smov 0  }
   0x2   :  { %s845_s8 = smov 0   ;;  %s847_s9 = smov 0  }
   0x3 LB: > { %s23_s10 = sadd.s32 1, %s803_s8  ;;  %s617_s11 = sadd.s32 4294967295, %s807_s9   ;;  %s807_s9 = sphi %s847_s9, %s14_s9   ;;  %s803_s8 = sphi %s845_s8, %s1290_s8   ;;  %s799_s7 = sphi %s843_s7, %s1289_s7   ;;  %s795_s6 = sphi %s841_s6, %s1288_s6  }
   0x4   : > { %p25_p0 = scmp.ge.s32.totalorder %s23_s10, 4  ;;  %p41_p1 = scmp.ne.s32.totalorder %s799_s7, %s795_s6 }
   0x5   : > { %s32_s12 = sadd.s32 1, %s799_s7  ;;  %p42_p2 = scmp.eq.s32.totalorder %s617_s11, 3 }
   0x6   : > { %s1292_s10 = smov (%p25_p0, %s23_s10), 0  ;;  %p36_p3 = scmp.eq.s32.totalorder %s807_s9, 3 }
   0x7   : > { %s27_s13 = ssub.s32 %s803_s8, %s1292_s10  ;;  %p871_p6 = por %p42_p2, %p41_p1 }
   0x8   : > { %p30_p4 = scmp.eq.s32.totalorder %s27_s13, 0  ;;  %p618_p5 = scmp.ne.s32.totalorder %s27_s13, 0 }
   0x9   : > { %p619_p8 = scmp.ge.s32.totalorder %s807_s9, 4 }
   0xa   : > { %s876_s15 = scalar_select %p30_p4, %s799_s7, %s32_s12  }
   0xb   : > { %p878_p7 = por %p618_p5, %p36_p3  ;;  %51 = sbr.rel (%p619_p8) target bundleno = 204 (0xcc), region = 12 }
   0xc   : > { %s56_s17 = sand.u32 (!%p619_p8), 1, %s799_s7   ;;  %s60_s18 = smul.u32 (!%p619_p8), 40, %s803_s8 }
   0xd   : > { %s624_s19 = smul.u32 (!%p619_p8), 24, %s56_s17  ;;  %s825_s23 = smov (!%p619_p8), [#allocation2]  }
   0xe   : > { %s63_s22 = scalar_lea.hbm (!%p619_p8), %s1247_s0, %s60_s18  ;;  %s73_s24 = sshll.u32 (!%p619_p8), %s825_s23, 4  ;;  %s74_s24 = int_to_ptr.vmem [resolvable:$true] %s73_s24 }
   0xf   : > { %s71_s25 = sshll.u32 (!%p619_p8), %s63_s22, 4  ;;  %s890_s26 = scalar_lea.vmem (!%p619_p8), [#allocation4], %s624_s19  ;;  %s72_s25 = int_to_ptr.hbm [resolvable:$true] %s71_s25 }
  0x10   : > { %76 = dma.hbm_to_vmem [thread:$0]  %s72_s25, 640, %s74_s24, [#allocation3] }
  0x11   : > { %787 = dma.done.wait [#allocation3], 640 }
  0x12   : > { %788 = vsyncadd [#allocation3], 4294966656  ;;  %v85_v0 = vlaneseq  ;;  %v81_v5 = vld [vmem:[#allocation2 + $0x8] sm:$0xff]   ;;  %v82_v6 = vld [vmem:[#allocation2 + $0x10] sm:$0xff]   ;;  %s910_s27 = smov 0  }
  0x13   : > { %v83_v7 = vld [vmem:[#allocation2 + $0x18] sm:$0xff]  }
  0x14   : > { %v892_v1 = vshrl.u32 %v85_v0, 7  ;;  %v894_v2 = vand.u32 127, %v85_v0 }
  0x16   : > { %v89_v3 = vadd.s32 24, %v892_v1  ;;  %vm115_vm0 = vcmp.lt.s32.totalorder %v894_v2, 18 }
  0x18   : > { %v98_v4 = vadd.s32 4294967288, %v89_v3 }
  0x1a   : > { %vm108_vm1 = vcmp.lt.s32.totalorder %v98_v4, 18 }
  0x1b   : > { %vm900_vm2 = vmand %vm108_vm1, %vm115_vm0 }
  0x1c LB: >> { %v826_v9 = vmov 0.0   ;;  %v920_v11 = vsel %vm115_vm0, %v819_v5, 0.0  ;;  %vm142_vm3 = vcmp.lt.s32.totalorder %v892_v1, 1  ;;  %v925_v12 = vsel %vm115_vm0, %v815_v6, 0.0  ;;  %s827_s28 = smov 1   ;;  %s828_s29 = smov 127   ;;  %s823_s27 = sphi %s910_s27, %s126_s27   ;;  %v819_v5 = vphi %v81_v5, %v1287_v5   ;;  %v815_v6 = vphi %v82_v6, %v1286_v6   ;;  %v811_v7 = vphi %v83_v7, %v1285_v7  }
  0x1d   : >> { %v137_v10 = vrot.slane %v826_v9, 7  ;;  %v138_v13 = vrot.slane %v920_v11, 7  ;;  %v139_v14 = vrot.slane %v925_v12, 7  ;;  %v931_v15 = vsel %vm900_vm2, %v811_v7, 0.0  ;;  %s126_s27 = sadd.s32 1, %s823_s27  }
  0x1e   : >> { %v140_v16 = vrot.slane %v931_v15, 7  ;;  %v154_v23 = vrot.slane %v920_v11, 1  ;;  %v155_v24 = vrot.slane %v925_v12, 1  ;;  %v153_v25 = vrot.slane %v826_v9, 1  ;;  %p123_p9 = scmp.ge.s32.totalorder %s126_s27, 3  }
  0x1f   : >> { %v146_v17 = vsel %vm142_vm3, %v137_v10, %v138_v13  ;;  %v145_v18 = vsel %vm142_vm3, %v138_v13, %v139_v14  ;;  %v156_v26 = vrot.slane %v931_v15, 1  ;;  %vm158_vm4 = vcmp.lt.s32.totalorder %v892_v1, 7  ;;  %s625_s30 = smul.u32 (%p123_p9), 24, %s803_s8  ;;  %s532_s2 = sshll.u32 (%p123_p9), %s890_s26, 4  ;;  %s533_s2 = int_to_ptr.vmem [resolvable:$true] %s532_s2 }
  0x20   : >> { %v935_v19 = vadd.f32 %v146_v17, %v920_v11  ;;  %v938_v20 = vadd.f32 %v145_v18, %v925_v12  ;;  %v144_v21 = vsel %vm142_vm3, %v139_v14, %v140_v16  ;;  %v161_v27 = vsel %vm158_vm4, %v154_v23, %v155_v24  ;;  %s518_s12 = scalar_lea.sflag (%p123_p9), [#allocation5], %s56_s17  ;;  %s829_s13 = smov (%p123_p9), 128  }
  0x21   : >> { %v941_v22 = vadd.f32 %v144_v21, %v931_v15  ;;  %v159_v28 = vsel %vm158_vm4, %v156_v26, %v153_v25  ;;  %v160_v29 = vsel %vm158_vm4, %v155_v24, %v156_v26  ;;  %v960_v30 = vadd.f32 %v161_v27, %v920_v11  ;;  %s531_s5 = scalar_lea.hbm (%p123_p9), %s1248_s1, %s625_s30  ;;  %s830_s18 = smov (%p123_p9), 8  }
  0x22   : >> { %181 = vrot.lane.b32.xlu0 %v935_v19, %s827_s28  ;;  %198 = vrot.lane.b32.xlu2 %v938_v20, %s828_s29  ;;  %v167_v31 = vadd.f32 %v159_v28, %v931_v15  ;;  %v964_v32 = vadd.f32 %v160_v29, %v925_v12  ;;  %s534_s11 = sshll.u32 (%p123_p9), %s531_s5, 4  ;;  %s535_s11 = int_to_ptr.hbm [resolvable:$true] %s534_s11 }
  0x23   : >> { %185 = vrot.lane.b32.xlu1 %v941_v22, %s827_s28  ;;  %v170_v33 = vadd.f32 %v960_v30, %v935_v19 }
  0x24   : >> { %v172_v34 = vadd.f32 %v167_v31, %v941_v22  ;;  %v171_v35 = vadd.f32 %v964_v32, %v938_v20 }
  0x25   : >> { %v982_v36 = vsub.f32 %v170_v33, %v920_v11 }
  0x26   : >> { %v985_v37 = vsub.f32 %v172_v34, %v931_v15  ;;  %v988_v38 = vsub.f32 %v171_v35, %v925_v12 }
  0x2a   : >> { %183 = vrot.lane.b32.xlu0 %v938_v20, %s827_s28  ;;  %200 = vrot.lane.b32.xlu2 %v941_v22, %s828_s29 }
  0x2b   : >> { %196 = vrot.lane.b32.xlu1 %v935_v19, %s828_s29 }
  0x32   : >> { %211 = vrot.lane.b32.xlu0 %v960_v30, %s827_s28  ;;  %215 = vrot.lane.b32.xlu2 %v167_v31, %s827_s28 }
  0x33   : >> { %213 = vrot.lane.b32.xlu1 %v964_v32, %s827_s28 }
  0x3a   : >> { %226 = vrot.lane.b32.xlu0 %v960_v30, %s828_s29  ;;  %230 = vrot.lane.b32.xlu2 %v167_v31, %s828_s29 }
  0x3b   : >> { %228 = vrot.lane.b32.xlu1 %v964_v32, %s828_s29 }
  0x42   : >> { %241 = vrot.lane.b32.xlu0 %v982_v36, %s827_s28  ;;  %245 = vrot.lane.b32.xlu2 %v985_v37, %s827_s28 }
  0x43   : >> { %243 = vrot.lane.b32.xlu1 %v988_v38, %s827_s28 }
  0x4a   : >> { %256 = vrot.lane.b32.xlu0 %v982_v36, %s828_s29  ;;  %260 = vrot.lane.b32.xlu2 %v985_v37, %s828_s29 }
  0x4b   : >> { %258 = vrot.lane.b32.xlu1 %v988_v38, %s828_s29 }
  0x7c   : >> { %v199_v39 = vpop.permute.xlu2 %198 }
  0x7d   : >> { %v206_v6 = vadd.f32 %v199_v39, %v938_v20 }
  0x7f   : >> { %v276_v25 = vmul.f32 0.25, %v206_v6 }
  0x84   : >> { %v201_v40 = vpop.permute.xlu2 %200 }
  0x85   : >> { %v207_v42 = vadd.f32 %v201_v40, %v941_v22 }
  0x87   : >> { %v277_v44 = vmul.f32 0.25, %v207_v42 }
  0x89   : >> { %v342_v50 = vsub.f32 %v277_v44, %v931_v15 }
  0x8b   : >> { %v347_v59 = vand.u32 2147483647, %v342_v50 }
  0x8c   : >> { %v216_v41 = vpop.permute.xlu2 %215 }
  0x8d   : >> { %v222_v43 = vadd.f32 %v216_v41, %v167_v31 }
  0x8f   : >> { %v282_v45 = vmul.f32 0.25, %v222_v43 }
  0x91   : >> { %v367_v54 = vsub.f32 %v282_v45, %v931_v15 }
  0x93   : >> { %v372_v63 = vand.u32 2147483647, %v367_v54 }
  0x94   : >> { %v182_v46 = vpop.permute.xlu0 %181  ;;  %v231_v47 = vpop.permute.xlu2 %230 }
  0x95   : >> { %v237_v48 = vadd.f32 %v231_v47, %v167_v31  ;;  %v186_v49 = vpop.permute.xlu1 %185  ;;  %v190_v18 = vadd.f32 %v182_v46, %v935_v19 }
  0x96   : >> { %v192_v51 = vadd.f32 %v186_v49, %v941_v22  ;;  %v1052_v49 = vsub.f32 %v276_v25, %v925_v12 }
  0x97   : >> { %v287_v52 = vmul.f32 0.25, %v237_v48  ;;  %v307_v53 = vadd.f32 %v237_v48, %v222_v43  ;;  %v270_v34 = vmul.f32 0.25, %v190_v18 }
  0x98   : >> { %v272_v55 = vmul.f32 0.25, %v192_v51  ;;  %v292_v56 = vadd.f32 %v207_v42, %v192_v51 }
  0x99   : >> { %v312_v57 = vsub.f32 %v307_v53, %v167_v31  ;;  %v392_v58 = vsub.f32 %v287_v52, %v931_v15  ;;  %v1058_v52 = vsub.f32 %v270_v34, %v920_v11 }
  0x9a   : >> { %v297_v60 = vsub.f32 %v292_v56, %v941_v22  ;;  %v332_v61 = vsub.f32 %v272_v55, %v931_v15 }
  0x9b   : >> { %v317_v62 = vmul.f32 0.16666667, %v312_v57  ;;  %v397_v7 = vand.u32 2147483647, %v392_v58 }
  0x9c   : >> { %v302_v0 = vmul.f32 0.16666667, %v297_v60  ;;  %v337_v3 = vand.u32 2147483647, %v332_v61  ;;  %v184_v4 = vpop.permute.xlu0 %183  ;;  %v246_v5 = vpop.permute.xlu2 %245 }
  0x9d   : >> { %v191_v9 = vadd.f32 %v184_v4, %v938_v20  ;;  %v197_v10 = vpop.permute.xlu1 %196  ;;  %v252_v17 = vadd.f32 %v246_v5, %v985_v37  ;;  %v1020_v21 = vsub.f32 %v317_v62, %v931_v15 }
  0x9e   : >> { %vm1011_vm5 = vcmp.lt.f32.partialorder %v347_v59, %v337_v3  ;;  %v417_v14 = vsub.f32 %v302_v0, %v931_v15  ;;  %v205_v16 = vadd.f32 %v197_v10, %v935_v19 }
  0x9f   : >> { %v362_v22 = vsel %vm1011_vm5, %v347_v59, %v337_v3  ;;  %v271_v24 = vmul.f32 0.25, %v191_v9  ;;  %v357_v26 = vsel %vm1011_vm5, %v342_v50, %v332_v61  ;;  %v322_v33 = vmul.f32 0.16666667, %v252_v17 }
  0xa0   : >> { %vm1024_vm6 = vcmp.lt.f32.partialorder %v372_v63, %v362_v22  ;;  %v422_v29 = vand.u32 2147483647, %v417_v14  ;;  %v275_v31 = vmul.f32 0.25, %v205_v16  ;;  %v447_v35 = vand.u32 2147483647, %v1020_v21 }
  0xa1   : >> { %v387_v27 = vsel %vm1024_vm6, %v372_v63, %v362_v22  ;;  %v291_v40 = vadd.f32 %v206_v6, %v191_v9  ;;  %v1044_v42 = vsub.f32 %v271_v24, %v925_v12  ;;  %v290_v43 = vadd.f32 %v205_v16, %v190_v18 }
  0xa2   : >> { %vm1032_vm7 = vcmp.lt.f32.partialorder %v397_v7, %v387_v27  ;;  %v382_v45 = vsel %vm1024_vm6, %v367_v54, %v357_v26  ;;  %v467_v47 = vsub.f32 %v322_v33, %v931_v15  ;;  %v1055_v50 = vsub.f32 %v275_v31, %v920_v11 }
  0xa3   : >> { %v412_v39 = vsel %vm1032_vm7, %v397_v7, %v387_v27  ;;  %v296_v53 = vsub.f32 %v291_v40, %v938_v20  ;;  %v407_v55 = vsel %vm1032_vm7, %v392_v58, %v382_v45  ;;  %v336_v56 = vand.u32 2147483647, %v1044_v42 }
  0xa4   : >> { %vm1039_vm8 = vcmp.lt.f32.partialorder %v422_v29, %v412_v39  ;;  %v212_v44 = vpop.permute.xlu0 %211  ;;  %v261_v51 = vpop.permute.xlu2 %260  ;;  %v295_v57 = vsub.f32 %v290_v43, %v935_v19  ;;  %v472_v60 = vand.u32 2147483647, %v467_v47  ;;  %v346_v20 = vand.u32 2147483647, %v1052_v49 }
  0xa5   : >> { %v437_v46 = vsel %vm1039_vm8, %v422_v29, %v412_v39  ;;  %v214_v48 = vpop.permute.xlu1 %213  ;;  %v220_v59 = vadd.f32 %v212_v44, %v960_v30  ;;  %v267_v62 = vadd.f32 %v261_v51, %v985_v37  ;;  %v345_v63 = vand.u32 2147483647, %v1055_v50 }
  0xa6   : >> { %vm1061_vm9 = vcmp.lt.f32.partialorder %v447_v35, %v437_v46  ;;  %v221_v61 = vadd.f32 %v214_v48, %v964_v32  ;;  %v432_v58 = vsel %vm1039_vm8, %v417_v14, %v407_v55  ;;  %v301_v4 = vmul.f32 0.16666667, %v296_v53 }
  0xa7   : >> { %v462_v0 = vsel %vm1061_vm9, %v447_v35, %v437_v46  ;;  %v280_v3 = vmul.f32 0.25, %v220_v59  ;;  %v327_v5 = vmul.f32 0.16666667, %v267_v62  ;;  %v335_v6 = vand.u32 2147483647, %v1058_v52 }
  0xa8   : >> { %v281_v19 = vmul.f32 0.25, %v221_v61  ;;  %vm1079_vm10 = vcmp.lt.f32.partialorder %v346_v20, %v336_v56  ;;  %v300_v37 = vmul.f32 0.16666667, %v295_v57  ;;  %vm1086_vm11 = vcmp.lt.f32.partialorder %v472_v60, %v462_v0 }
  0xa9   : >> { %v1084_v9 = vsub.f32 %v280_v3, %v920_v11  ;;  %v492_v16 = vsub.f32 %v327_v5, %v931_v15  ;;  %vm1093_vm12 = vcmp.lt.f32.partialorder %v345_v63, %v335_v6  ;;  %v457_v23 = vsel %vm1061_vm9, %v1020_v21, %v432_v58 }
  0xaa   : >> { %v366_v14 = vsub.f32 %v281_v19, %v925_v12  ;;  %v1103_v26 = vsub.f32 %v301_v4, %v925_v12  ;;  %v487_v33 = vsel %vm1086_vm11, %v472_v60, %v462_v0  ;;  %v482_v39 = vsel %vm1086_vm11, %v467_v47, %v457_v23 }
  0xab   : >> { %v370_v24 = vand.u32 2147483647, %v1084_v9  ;;  %v497_v27 = vand.u32 2147483647, %v492_v16  ;;  %v360_v21 = vsel %vm1093_vm12, %v345_v63, %v335_v6  ;;  %v415_v41 = vsub.f32 %v300_v37, %v920_v11 }
  0xac   : >> { %v227_v10 = vpop.permute.xlu0 %226  ;;  %v371_v31 = vand.u32 2147483647, %v366_v14  ;;  %v361_v46 = vsel %vm1079_vm10, %v346_v20, %v336_v56  ;;  %v421_v63 = vand.u32 2147483647, %v1103_v26 }
  0xad   : >> { %v235_v17 = vadd.f32 %v227_v10, %v960_v30  ;;  %v229_v18 = vpop.permute.xlu1 %228  ;;  %vm502_vm13 = vcmp.lt.f32.partialorder %v497_v27, %v487_v33  ;;  %vm1113_vm14 = vcmp.lt.f32.partialorder %v370_v24, %v360_v21  ;;  %v356_v27 = vsel %vm1079_vm10, %v1052_v49, %v1044_v42 }
  0xae   : >> { %v236_v25 = vadd.f32 %v229_v18, %v964_v32  ;;  %v507_v44 = vsel %vm502_vm13, %v492_v16, %v482_v39  ;;  %vm1124_vm15 = vcmp.lt.f32.partialorder %v371_v31, %v361_v46  ;;  %v385_v57 = vsel %vm1113_vm14, %v370_v24, %v360_v21 }
  0xaf   : >> { %v285_v28 = vmul.f32 0.25, %v235_v17  ;;  %v305_v29 = vadd.f32 %v235_v17, %v220_v59  ;;  %v1121_v47 = vadd.f32 %v507_v44, %v931_v15   ;;  %v386_v3 = vsel %vm1124_vm15, %v371_v31, %v361_v46 }
  0xb0   : >> { %v286_v34 = vmul.f32 0.25, %v236_v25  ;;  %v306_v35 = vadd.f32 %v236_v25, %v221_v61  ;;  %v420_v61 = vand.u32 2147483647, %v415_v41  ;;  %v355_v24 = vsel %vm1093_vm12, %v1055_v50, %v1058_v52 }
  0xb1   : >> { %v310_v40 = vsub.f32 %v305_v29, %v960_v30  ;;  %v390_v45 = vsub.f32 %v285_v28, %v920_v11  ;;  %v380_v28 = vsel %vm1113_vm14, %v1084_v9, %v355_v24  ;;  %v381_v31 = vsel %vm1124_vm15, %v366_v14, %v356_v27  ;;  %516 = vst [vmem:[%s890_s26 + $0x10] sm:$0xff] (%p123_p9), %v1121_v47 }
  0xb2   : >> { %v311_v51 = vsub.f32 %v306_v35, %v964_v32  ;;  %v391_v54 = vsub.f32 %v286_v34, %v925_v12 }
  0xb3   : >> { %v315_v48 = vmul.f32 0.16666667, %v310_v40  ;;  %v395_v53 = vand.u32 2147483647, %v390_v45 }
  0xb4   : >> { %v242_v55 = vpop.permute.xlu0 %241  ;;  %v316_v56 = vmul.f32 0.16666667, %v311_v51  ;;  %v396_v62 = vand.u32 2147483647, %v391_v54 }
  0xb5   : >> { %v440_v59 = vsub.f32 %v315_v48, %v920_v11  ;;  %v250_v15 = vadd.f32 %v242_v55, %v982_v36  ;;  %v244_v60 = vpop.permute.xlu1 %243  ;;  %vm1133_vm1 = vcmp.lt.f32.partialorder %v395_v53, %v385_v57 }
  0xb6   : >> { %v251_v20 = vadd.f32 %v244_v60, %v988_v38  ;;  %v410_v0 = vsel %vm1133_vm1, %v395_v53, %v385_v57  ;;  %v441_v58 = vsub.f32 %v316_v56, %v925_v12  ;;  %vm1148_vm4 = vcmp.lt.f32.partialorder %v396_v62, %v386_v3 }
  0xb7   : >> { %vm1144_vm3 = vcmp.lt.f32.partialorder %v420_v61, %v410_v0  ;;  %v320_v5 = vmul.f32 0.16666667, %v250_v15  ;;  %v445_v37 = vand.u32 2147483647, %v440_v59  ;;  %v411_v10 = vsel %vm1148_vm4, %v396_v62, %v386_v3 }
  0xb8   : >> { %v321_v6 = vmul.f32 0.16666667, %v251_v20  ;;  %v446_v13 = vand.u32 2147483647, %v441_v58  ;;  %vm1154_vm5 = vcmp.lt.f32.partialorder %v421_v63, %v411_v10  ;;  %v435_v17 = vsel %vm1144_vm3, %v420_v61, %v410_v0 }
  0xb9   : >> { %v465_v18 = vsub.f32 %v320_v5, %v920_v11  ;;  %v436_v25 = vsel %vm1154_vm5, %v421_v63, %v411_v10  ;;  %vm1177_vm6 = vcmp.lt.f32.partialorder %v445_v37, %v435_v17  ;;  %v405_v7 = vsel %vm1133_vm1, %v390_v45, %v380_v28 }
  0xba   : >> { %v466_v23 = vsub.f32 %v321_v6, %v925_v12  ;;  %vm1184_vm7 = vcmp.lt.f32.partialorder %v446_v13, %v436_v25  ;;  %v406_v14 = vsel %vm1148_vm4, %v391_v54, %v381_v31  ;;  %v460_v35 = vsel %vm1177_vm6, %v445_v37, %v435_v17 }
  0xbb   : >> { %v470_v50 = vand.u32 2147483647, %v465_v18  ;;  %v461_v21 = vsel %vm1184_vm7, %v446_v13, %v436_v25 }
  0xbc   : >> { %v257_v29 = vpop.permute.xlu0 %256  ;;  %v471_v49 = vand.u32 2147483647, %v466_v23 }
  0xbd   : >> { %v265_v52 = vadd.f32 %v257_v29, %v982_v36  ;;  %v259_v22 = vpop.permute.xlu1 %258  ;;  %v430_v36 = vsel %vm1144_vm3, %v415_v41, %v405_v7  ;;  %vm475_vm8 = vcmp.lt.f32.partialorder %v470_v50, %v460_v35  ;;  %v1285_v7 = vmov %v1121_v47 }
  0xbe   : >> { %v266_v9 = vadd.f32 %v259_v22, %v988_v38  ;;  %v431_v38 = vsel %vm1154_vm5, %v1103_v26, %v406_v14  ;;  %vm476_vm9 = vcmp.lt.f32.partialorder %v471_v49, %v461_v21  ;;  %v455_v45 = vsel %vm1177_vm6, %v440_v59, %v430_v36 }
  0xbf   : >> { %v325_v34 = vmul.f32 0.16666667, %v265_v52  ;;  %v485_v46 = vsel %vm475_vm8, %v470_v50, %v460_v35  ;;  %v480_v41 = vsel %vm475_vm8, %v465_v18, %v455_v45  ;;  %v456_v51 = vsel %vm1184_vm7, %v441_v58, %v431_v38 }
  0xc0   : >> { %v326_v39 = vmul.f32 0.16666667, %v266_v9  ;;  %v486_v30 = vsel %vm476_vm9, %v471_v49, %v461_v21  ;;  %v481_v53 = vsel %vm476_vm9, %v466_v23, %v456_v51 }
  0xc1   : >> { %v490_v40 = vsub.f32 %v325_v34, %v920_v11 }
  0xc2   : >> { %v491_v43 = vsub.f32 %v326_v39, %v925_v12 }
  0xc3   : >> { %v495_v44 = vand.u32 2147483647, %v490_v40 }
  0xc4   : >> { %v496_v48 = vand.u32 2147483647, %v491_v43 }
  0xc5   : >> { %vm500_vm10 = vcmp.lt.f32.partialorder %v495_v44, %v485_v46 }
  0xc6   : >> { %v505_v54 = vsel %vm500_vm10, %v490_v40, %v480_v41  ;;  %vm501_vm11 = vcmp.lt.f32.partialorder %v496_v48, %v486_v30  ;;  %125 = sbr.rel (!%p123_p9) target bundleno = 28 (0x1c), region = 56 }
  0xc7   : >> { %v510_v26 = vadd.f32 %v505_v54, %v920_v11   ;;  %v506_v55 = vsel %vm501_vm11, %v491_v43, %v481_v53 }
  0xc8   : >> { %v511_v57 = vadd.f32 %v506_v55, %v925_v12  }
  0xc9   : >> { %v1287_v5 = vmov %v510_v26  ;;  %514 = vst [vmem:[%s890_s26] sm:$0xff] (%p123_p9), %v510_v26 }
  0xca   : >> { %v1286_v6 = vmov %v511_v57  ;;  %515 = vst [vmem:[%s890_s26 + $0x8] sm:$0xff] (%p123_p9), %v511_v57 }
  0xcb   : > { %626 = dma.vmem_to_hbm [thread:$0]  (%p878_p7), %s533_s2, 384, %s535_s11, %s518_s12, %s829_s13, %s829_s13, %s830_s18  }
  0xcc PF: > { %p632_p10 = scmp.ge.s32.totalorder %s807_s9, 1  ;;  %s549_s8 = sand.u32 1, %s795_s6  }
  0xcd   : > { %s550_s19 = scalar_lea.sflag [#allocation5], %s549_s8 }
  0xce   : > { %p629_p11 = pnand %p632_p10, %p871_p6 }
  0xd0   : > { %p630_p12 = pneg %p629_p11 }
  0xd2   : > { %790 = dma.done.wait (%p630_p12), %s550_s19, 384  }
  0xd3   : > { %792 = vsyncadd (%p630_p12), %s550_s19, 4294966912  ;;  %s14_s9 = sadd.s32 1, %s807_s9   ;;  %s1288_s6 = smov %s799_s7 }
  0xd4   : > { %p11_p13 = scmp.ge.s32.totalorder %s14_s9, 5   ;;  %s1289_s7 = smov %s876_s15 }
  0xd5   : > { %s1290_s8 = smov %s1292_s10 }
  0xd6   :  { %13 = sbr.rel (!%p11_p13) target bundleno = 3 (0x3), region = 67 }
  0xdb   :  { %556 = vsyncpa [#allocation5], 1 }
  0xdc   :  { %558 = vsyncpa [#allocation5 + $0x1], 1 }
  0xdd   :  { %559 = vsyncmov [#allocation3] }
  0xe0   :  { %s560_s14 = vpop.sfrf %559 }
  0xe1   :  { %p623_p0 = scmp.ne.s32.totalorder %s560_s14, 0 }
  0xe3   :  { %564 = shalt.err (%p623_p0)  }

</bundles_post_ra>
